<compile_context>
chip_gen: v7x
topology: tpu7x:2x2x1
jax: 0.10.0
libtpu: 0.0.40
codegen_flags: <defaults>
</compile_context>

<pallas_src>
import jax
import jax.numpy as jnp
from jax.experimental import pallas as pl
from jax.experimental.pallas import tpu as pltpu


def _lstm_fc_kernel(x_ref, h0_ref, c0_ref,
                    wih_ref, whh_ref, b_ref, wfc_ref, bfc_ref,
                    logits_ref, hn_ref, cn_ref,
                    gx_sc, hs_sc):
    """Whole-sequence LSTM + FC in one invocation.

    x_ref      : (T*B, E)   embedded tokens, time-major rows (row = t*B + b)
    h0/c0_ref  : (B, H)     initial state
    wih_ref    : (E, 4H)    input->gates weights (pre-transposed, PyTorch i,f,g,o)
    whh_ref    : (H, 4H)    hidden->gates weights (pre-transposed)
    b_ref      : (1, 4H)    b_ih + b_hh (folded)
    wfc_ref    : (H, V)     fc weight (pre-transposed)
    bfc_ref    : (1, V)     fc bias
    logits_ref : (B, T, V)  output logits, batch-first
    hn/cn_ref  : (B, H)     final state
    gx_sc      : (T*B, 4H)  f32 scratch: hoisted input projection (+ bias)
    hs_sc      : (T, B, H)  f32 scratch: hidden-state history for the batched FC
    """
    B, T, _ = logits_ref.shape
    H = hn_ref.shape[1]

    # (1) Hoisted input projection for the whole sequence: one lane-dense GEMM.
    gx_sc[...] = (jnp.dot(x_ref[...], wih_ref[...],
                          preferred_element_type=jnp.float32)
                  + b_ref[...])

    # (2) Serial recurrence: only h @ W_hh is left on the critical path.
    #     h/c are carried in vregs; h_t is stashed in VMEM for the batched FC.
    def step(t, carry):
        h, c = carry
        gates = (gx_sc[pl.ds(t * B, B), :]
                 + jnp.dot(h, whh_ref[...], preferred_element_type=jnp.float32))
        sg = jax.nn.sigmoid(gates)                 # full-width (B, 4H) slab
        i_g = sg[:, 0 * H:1 * H]
        f_g = sg[:, 1 * H:2 * H]
        o_g = sg[:, 3 * H:4 * H]
        g_g = jnp.tanh(gates[:, 2 * H:3 * H])
        c_new = f_g * c + i_g * g_g
        h_new = o_g * jnp.tanh(c_new)
        hs_sc[t] = h_new
        return h_new, c_new

    h_last, c_last = jax.lax.fori_loop(
        0, T, step,
        (h0_ref[...].astype(jnp.float32), c0_ref[...].astype(jnp.float32)),
        unroll=True)

    # (3) Final state written exactly once.
    hn_ref[...] = h_last.astype(hn_ref.dtype)
    cn_ref[...] = c_last.astype(cn_ref.dtype)

    # (4) Hoisted vocab projection, emitted batch-first.  Unrolled over the
    #     (small, static) batch so each dot is a plain 2-D MXU GEMM and no
    #     in-kernel transpose / dynamic sublane store is required.
    hs = hs_sc[...]                                # (T, B, H)
    wfc = wfc_ref[...]
    bfc = bfc_ref[...]
    for bb in range(B):
        logits_ref[bb] = (jnp.dot(hs[:, bb, :], wfc,
                                  preferred_element_type=jnp.float32)
                          + bfc).astype(logits_ref.dtype)


def text_generator_forward(tokens, hidden, params):
    """tokens: (B, T) int32, hidden: (h0, c0) each (1, B, H).

    Returns (logits (B, T, V), (h_n (1, B, H), c_n (1, B, H))) — same
    semantics as the PyTorch module's forward.
    """
    emb, w_ih, w_hh, b, w_fc, b_fc = (params["emb"], params["w_ih"],
                                      params["w_hh"], params["b"],
                                      params["w_fc"], params["b_fc"])
    B, T = tokens.shape
    E = emb.shape[1]
    H = w_hh.shape[0]
    V = w_fc.shape[1]

    # Embedding gather straight into time-major row order (row = t*B + b):
    # no (B, T, E) -> (T, B, E) activation transpose through HBM.
    x_tb_e = jnp.take(emb, jnp.reshape(tokens.T, (-1,)), axis=0)   # (T*B, E)

    h0 = hidden[0][0]                              # (B, H)
    c0 = hidden[1][0]                              # (B, H)

    grid_spec = pltpu.PrefetchScalarGridSpec(
        num_scalar_prefetch=0,
        grid=(1,),                                  # single kernel invocation
        in_specs=[
            pl.BlockSpec((T * B, E), lambda i: (0, 0)),     # x (time-major rows)
            pl.BlockSpec((B, H), lambda i: (0, 0)),         # h0
            pl.BlockSpec((B, H), lambda i: (0, 0)),         # c0
            pl.BlockSpec((E, 4 * H), lambda i: (0, 0)),     # W_ih^T
            pl.BlockSpec((H, 4 * H), lambda i: (0, 0)),     # W_hh^T
            pl.BlockSpec((1, 4 * H), lambda i: (0, 0)),     # bias (b_ih + b_hh)
            pl.BlockSpec((H, V), lambda i: (0, 0)),         # W_fc^T
            pl.BlockSpec((1, V), lambda i: (0, 0)),         # fc bias
        ],
        out_specs=[
            pl.BlockSpec((B, T, V), lambda i: (0, 0, 0)),   # logits, batch-first
            pl.BlockSpec((B, H), lambda i: (0, 0)),         # h_n
            pl.BlockSpec((B, H), lambda i: (0, 0)),         # c_n
        ],
        scratch_shapes=[
            pltpu.VMEM((T * B, 4 * H), jnp.float32),  # hoisted input projection
            pltpu.VMEM((T, B, H), jnp.float32),       # hidden-state history
        ],
    )

    logits, h_n, c_n = pl.pallas_call(
        _lstm_fc_kernel,
        out_shape=(
            jax.ShapeDtypeStruct((B, T, V), jnp.float32),
            jax.ShapeDtypeStruct((B, H), jnp.float32),
            jax.ShapeDtypeStruct((B, H), jnp.float32),
        ),
        grid_spec=grid_spec,
        compiler_params=pltpu.CompilerParams(
            dimension_semantics=("arbitrary",)),   # sequential recurrence
    )(x_tb_e, h0, c0, w_ih, w_hh, b, w_fc, b_fc)

    return logits, (h_n[None], c_n[None])


def _reference_forward(tokens, hidden, params):
    """Pure-JAX reference of the same math (for validation)."""
    emb, w_ih, w_hh, b, w_fc, b_fc = (params["emb"], params["w_ih"],
                                      params["w_hh"], params["b"],
                                      params["w_fc"], params["b_fc"])
    H = w_hh.shape[0]
    x = jnp.take(emb, tokens, axis=0)  # (B, T, E)
    h, c = hidden[0][0], hidden[1][0]

    def step(carry, x_t):
        h, c = carry
        gates = x_t @ w_ih + h @ w_hh + b[0]
        i = jax.nn.sigmoid(gates[:, 0 * H:1 * H])
        f = jax.nn.sigmoid(gates[:, 1 * H:2 * H])
        g = jnp.tanh(gates[:, 2 * H:3 * H])
        o = jax.nn.sigmoid(gates[:, 3 * H:4 * H])
        c = f * c + i * g
        h = o * jnp.tanh(c)
        return (h, c), h

    (h, c), hs = jax.lax.scan(step, (h, c), jnp.transpose(x, (1, 0, 2)))
    logits = jnp.einsum("tbh,hv->btv", hs, w_fc) + b_fc[0]
    return logits, (h[None], c[None])


if __name__ == "__main__":
    # Small shapes consistent with the module.
    VOCAB, EMB, HID = 128, 32, 32
    B, T = 2, 8

    key = jax.random.PRNGKey(0)
    k_emb, k_wih, k_whh, k_b, k_wfc, k_bfc, k_tok, k_h, k_c = jax.random.split(key, 9)

    scale = 1.0 / jnp.sqrt(HID)
    params = {
        "emb":  jax.random.normal(k_emb, (VOCAB, EMB), jnp.float32) * 0.1,
        # stored pre-transposed relative to PyTorch's (4H, E)/(4H, H) layout
        "w_ih": jax.random.uniform(k_wih, (EMB, 4 * HID), jnp.float32, -scale, scale),
        "w_hh": jax.random.uniform(k_whh, (HID, 4 * HID), jnp.float32, -scale, scale),
        "b":    jax.random.uniform(k_b, (1, 4 * HID), jnp.float32, -scale, scale),  # b_ih + b_hh folded
        "w_fc": jax.random.uniform(k_wfc, (HID, VOCAB), jnp.float32, -scale, scale),
        "b_fc": jax.random.uniform(k_bfc, (1, VOCAB), jnp.float32, -scale, scale),
    }

    tokens = jax.random.randint(k_tok, (B, T), 0, VOCAB, jnp.int32)
    h0 = jax.random.normal(k_h, (1, B, HID), jnp.float32)
    c0 = jax.random.normal(k_c, (1, B, HID), jnp.float32)

    logits, (h_n, c_n) = text_generator_forward(tokens, (h0, c0), params)
    jax.block_until_ready((logits, h_n, c_n))

    # Validate against a pure-JAX reference.
    ref_logits, (ref_h, ref_c) = _reference_forward(tokens, (h0, c0), params)
    assert logits.shape == (B, T, VOCAB)
    assert h_n.shape == (1, B, HID) and c_n.shape == (1, B, HID)
    assert jnp.allclose(logits, ref_logits, atol=1e-4, rtol=1e-4)
    assert jnp.allclose(h_n, ref_h, atol=1e-5, rtol=1e-5)
    assert jnp.allclose(c_n, ref_c, atol=1e-5, rtol=1e-5)

    print("KERNEL_OK")
</pallas_src>

<mosaic_0001>
module attributes {stable_mosaic.version = 11 : i64} {
  func.func @_lstm_fc_kernel(%arg0: i32, %arg1: memref<16x32xf32, #tpu.memory_space<vmem>>, %arg2: memref<2x32xf32, #tpu.memory_space<vmem>>, %arg3: memref<2x32xf32, #tpu.memory_space<vmem>>, %arg4: memref<32x128xf32, #tpu.memory_space<vmem>>, %arg5: memref<32x128xf32, #tpu.memory_space<vmem>>, %arg6: memref<1x128xf32, #tpu.memory_space<vmem>>, %arg7: memref<32x128xf32, #tpu.memory_space<vmem>>, %arg8: memref<1x128xf32, #tpu.memory_space<vmem>>, %arg9: memref<2x8x128xf32, #tpu.memory_space<vmem>>, %arg10: memref<2x32xf32, #tpu.memory_space<vmem>>, %arg11: memref<2x32xf32, #tpu.memory_space<vmem>>, %arg12: memref<16x128xf32, #tpu.memory_space<vmem>>, %arg13: memref<8x2x32xf32, #tpu.memory_space<vmem>>) attributes {dimension_semantics = [#tpu.dimension_semantics<arbitrary>], iteration_bounds = array<i64: 1>, scalar_prefetch = 0 : i64, scratch_operands = 2 : i64, tpu.core_type = #tpu.core_type<tc>, window_params = [{pipeline_mode = #tpu.pipeline_mode<synchronous>, transform_indices = @transform_0, window_bounds = array<i64: 16, 32>}, {pipeline_mode = #tpu.pipeline_mode<synchronous>, transform_indices = @transform_1, window_bounds = array<i64: 2, 32>}, {pipeline_mode = #tpu.pipeline_mode<synchronous>, transform_indices = @transform_2, window_bounds = array<i64: 2, 32>}, {pipeline_mode = #tpu.pipeline_mode<synchronous>, transform_indices = @transform_3, window_bounds = array<i64: 32, 128>}, {pipeline_mode = #tpu.pipeline_mode<synchronous>, transform_indices = @transform_4, window_bounds = array<i64: 32, 128>}, {pipeline_mode = #tpu.pipeline_mode<synchronous>, transform_indices = @transform_5, window_bounds = array<i64: 1, 128>}, {pipeline_mode = #tpu.pipeline_mode<synchronous>, transform_indices = @transform_6, window_bounds = array<i64: 32, 128>}, {pipeline_mode = #tpu.pipeline_mode<synchronous>, transform_indices = @transform_7, window_bounds = array<i64: 1, 128>}, {pipeline_mode = #tpu.pipeline_mode<synchronous>, transform_indices = @transform_8, window_bounds = array<i64: 2, 8, 128>}, {pipeline_mode = #tpu.pipeline_mode<synchronous>, transform_indices = @transform_9, window_bounds = array<i64: 2, 32>}, {pipeline_mode = #tpu.pipeline_mode<synchronous>, transform_indices = @transform_10, window_bounds = array<i64: 2, 32>}]} {
    %c0 = arith.constant 0 : index
    %c0_0 = arith.constant 0 : index
    %0 = vector.load %arg1[%c0, %c0_0] : memref<16x32xf32, #tpu.memory_space<vmem>>, vector<16x32xf32>
    %c0_1 = arith.constant 0 : index
    %c0_2 = arith.constant 0 : index
    %1 = vector.load %arg4[%c0_1, %c0_2] : memref<32x128xf32, #tpu.memory_space<vmem>>, vector<32x128xf32>
    %cst = arith.constant dense<0.000000e+00> : vector<16x128xf32>
    %2 = tpu.matmul %0, %1, %cst {dimension_numbers = #tpu.dot_dimension_numbers<[1], [0], [0], [1], [0, 0, 1, 1], [], []>} : vector<16x32xf32>, vector<32x128xf32>, vector<16x128xf32> -> vector<16x128xf32>
    %c0_3 = arith.constant 0 : index
    %c0_4 = arith.constant 0 : index
    %3 = vector.load %arg6[%c0_3, %c0_4] : memref<1x128xf32, #tpu.memory_space<vmem>>, vector<1x128xf32>
    %4 = vector.broadcast %3 : vector<1x128xf32> to vector<16x128xf32>
    %5 = arith.addf %2, %4 : vector<16x128xf32>
    %c0_5 = arith.constant 0 : index
    %c0_6 = arith.constant 0 : index
    %6 = vector.load %arg12[%c0_5, %c0_6] : memref<16x128xf32, #tpu.memory_space<vmem>>, vector<16x128xf32>
    tpu.vector_store %arg12[%c0_5, %c0_6], %5 {strides = array<i32>} : memref<16x128xf32, #tpu.memory_space<vmem>>, vector<16x128xf32>,
    %c0_7 = arith.constant 0 : index
    %c0_8 = arith.constant 0 : index
    %7 = vector.load %arg2[%c0_7, %c0_8] : memref<2x32xf32, #tpu.memory_space<vmem>>, vector<2x32xf32>
    %c0_9 = arith.constant 0 : index
    %c0_10 = arith.constant 0 : index
    %8 = vector.load %arg3[%c0_9, %c0_10] : memref<2x32xf32, #tpu.memory_space<vmem>>, vector<2x32xf32>
    %c0_i32 = arith.constant 0 : i32
    %c2_i32 = arith.constant 2 : i32
    %9 = arith.muli %c0_i32, %c2_i32 : i32
    %10 = arith.index_cast %9 : i32 to index
    %c0_11 = arith.constant 0 : index
    %11 = vector.load %arg12[%10, %c0_11] : memref<16x128xf32, #tpu.memory_space<vmem>>, vector<2x128xf32>
    %c0_12 = arith.constant 0 : index
    %c0_13 = arith.constant 0 : index
    %12 = vector.load %arg5[%c0_12, %c0_13] : memref<32x128xf32, #tpu.memory_space<vmem>>, vector<32x128xf32>
    %cst_14 = arith.constant dense<0.000000e+00> : vector<2x128xf32>
    %13 = tpu.matmul %7, %12, %cst_14 {dimension_numbers = #tpu.dot_dimension_numbers<[1], [0], [0], [1], [0, 0, 1, 1], [], []>} : vector<2x32xf32>, vector<32x128xf32>, vector<2x128xf32> -> vector<2x128xf32>
    %14 = arith.addf %11, %13 : vector<2x128xf32>
    %15 = arith.negf %14 : vector<2x128xf32>
    %16 = math.exp %15 : vector<2x128xf32>
    %cst_15 = arith.constant 1.000000e+00 : f32
    %17 = vector.broadcast %cst_15 : f32 to vector<2x128xf32>
    %18 = arith.addf %17, %16 : vector<2x128xf32>
    %19 = arith.divf %17, %18 : vector<2x128xf32>
    %20 = vector.extract_strided_slice %19 {offsets = [0, 0], sizes = [2, 32], strides = [1, 1]} : vector<2x128xf32> to vector<2x32xf32>
    %21 = vector.extract_strided_slice %19 {offsets = [0, 32], sizes = [2, 32], strides = [1, 1]} : vector<2x128xf32> to vector<2x32xf32>
    %22 = vector.extract_strided_slice %19 {offsets = [0, 96], sizes = [2, 32], strides = [1, 1]} : vector<2x128xf32> to vector<2x32xf32>
    %23 = vector.extract_strided_slice %14 {offsets = [0, 64], sizes = [2, 32], strides = [1, 1]} : vector<2x128xf32> to vector<2x32xf32>
    %24 = math.tanh %23 : vector<2x32xf32>
    %25 = arith.mulf %21, %8 : vector<2x32xf32>
    %26 = arith.mulf %20, %24 : vector<2x32xf32>
    %27 = arith.addf %25, %26 : vector<2x32xf32>
    %28 = math.tanh %27 : vector<2x32xf32>
    %29 = arith.mulf %22, %28 : vector<2x32xf32>
    %30 = arith.index_cast %c0_i32 : i32 to index
    %c0_16 = arith.constant 0 : index
    %c0_17 = arith.constant 0 : index
    %31 = vector.load %arg13[%30, %c0_16, %c0_17] : memref<8x2x32xf32, #tpu.memory_space<vmem>>, vector<1x2x32xf32>
    %32 = vector.shape_cast %31 : vector<1x2x32xf32> to vector<2x32xf32>
    %33 = vector.shape_cast %29 : vector<2x32xf32> to vector<1x2x32xf32>
    tpu.vector_store %arg13[%30, %c0_16, %c0_17], %33 {strides = array<i32>} : memref<8x2x32xf32, #tpu.memory_space<vmem>>, vector<1x2x32xf32>,
    %c1_i32 = arith.constant 1 : i32
    %c2_i32_18 = arith.constant 2 : i32
    %34 = arith.muli %c1_i32, %c2_i32_18 : i32
    %35 = arith.index_cast %34 : i32 to index
    %c0_19 = arith.constant 0 : index
    %36 = vector.load %arg12[%35, %c0_19] : memref<16x128xf32, #tpu.memory_space<vmem>>, vector<2x128xf32>
    %c0_20 = arith.constant 0 : index
    %c0_21 = arith.constant 0 : index
    %37 = vector.load %arg5[%c0_20, %c0_21] : memref<32x128xf32, #tpu.memory_space<vmem>>, vector<32x128xf32>
    %cst_22 = arith.constant dense<0.000000e+00> : vector<2x128xf32>
    %38 = tpu.matmul %29, %37, %cst_22 {dimension_numbers = #tpu.dot_dimension_numbers<[1], [0], [0], [1], [0, 0, 1, 1], [], []>} : vector<2x32xf32>, vector<32x128xf32>, vector<2x128xf32> -> vector<2x128xf32>
    %39 = arith.addf %36, %38 : vector<2x128xf32>
    %40 = arith.negf %39 : vector<2x128xf32>
    %41 = math.exp %40 : vector<2x128xf32>
    %cst_23 = arith.constant 1.000000e+00 : f32
    %42 = vector.broadcast %cst_23 : f32 to vector<2x128xf32>
    %43 = arith.addf %42, %41 : vector<2x128xf32>
    %44 = arith.divf %42, %43 : vector<2x128xf32>
    %45 = vector.extract_strided_slice %44 {offsets = [0, 0], sizes = [2, 32], strides = [1, 1]} : vector<2x128xf32> to vector<2x32xf32>
    %46 = vector.extract_strided_slice %44 {offsets = [0, 32], sizes = [2, 32], strides = [1, 1]} : vector<2x128xf32> to vector<2x32xf32>
    %47 = vector.extract_strided_slice %44 {offsets = [0, 96], sizes = [2, 32], strides = [1, 1]} : vector<2x128xf32> to vector<2x32xf32>
    %48 = vector.extract_strided_slice %39 {offsets = [0, 64], sizes = [2, 32], strides = [1, 1]} : vector<2x128xf32> to vector<2x32xf32>
    %49 = math.tanh %48 : vector<2x32xf32>
    %50 = arith.mulf %46, %27 : vector<2x32xf32>
    %51 = arith.mulf %45, %49 : vector<2x32xf32>
    %52 = arith.addf %50, %51 : vector<2x32xf32>
    %53 = math.tanh %52 : vector<2x32xf32>
    %54 = arith.mulf %47, %53 : vector<2x32xf32>
    %55 = arith.index_cast %c1_i32 : i32 to index
    %c0_24 = arith.constant 0 : index
    %c0_25 = arith.constant 0 : index
    %56 = vector.load %arg13[%55, %c0_24, %c0_25] : memref<8x2x32xf32, #tpu.memory_space<vmem>>, vector<1x2x32xf32>
    %57 = vector.shape_cast %56 : vector<1x2x32xf32> to vector<2x32xf32>
    %58 = vector.shape_cast %54 : vector<2x32xf32> to vector<1x2x32xf32>
    tpu.vector_store %arg13[%55, %c0_24, %c0_25], %58 {strides = array<i32>} : memref<8x2x32xf32, #tpu.memory_space<vmem>>, vector<1x2x32xf32>,
    %c2_i32_26 = arith.constant 2 : i32
    %c2_i32_27 = arith.constant 2 : i32
    %59 = arith.muli %c2_i32_26, %c2_i32_27 : i32
    %60 = arith.index_cast %59 : i32 to index
    %c0_28 = arith.constant 0 : index
    %61 = vector.load %arg12[%60, %c0_28] : memref<16x128xf32, #tpu.memory_space<vmem>>, vector<2x128xf32>
    %c0_29 = arith.constant 0 : index
    %c0_30 = arith.constant 0 : index
    %62 = vector.load %arg5[%c0_29, %c0_30] : memref<32x128xf32, #tpu.memory_space<vmem>>, vector<32x128xf32>
    %cst_31 = arith.constant dense<0.000000e+00> : vector<2x128xf32>
    %63 = tpu.matmul %54, %62, %cst_31 {dimension_numbers = #tpu.dot_dimension_numbers<[1], [0], [0], [1], [0, 0, 1, 1], [], []>} : vector<2x32xf32>, vector<32x128xf32>, vector<2x128xf32> -> vector<2x128xf32>
    %64 = arith.addf %61, %63 : vector<2x128xf32>
    %65 = arith.negf %64 : vector<2x128xf32>
    %66 = math.exp %65 : vector<2x128xf32>
    %cst_32 = arith.constant 1.000000e+00 : f32
    %67 = vector.broadcast %cst_32 : f32 to vector<2x128xf32>
    %68 = arith.addf %67, %66 : vector<2x128xf32>
    %69 = arith.divf %67, %68 : vector<2x128xf32>
    %70 = vector.extract_strided_slice %69 {offsets = [0, 0], sizes = [2, 32], strides = [1, 1]} : vector<2x128xf32> to vector<2x32xf32>
    %71 = vector.extract_strided_slice %69 {offsets = [0, 32], sizes = [2, 32], strides = [1, 1]} : vector<2x128xf32> to vector<2x32xf32>
    %72 = vector.extract_strided_slice %69 {offsets = [0, 96], sizes = [2, 32], strides = [1, 1]} : vector<2x128xf32> to vector<2x32xf32>
    %73 = vector.extract_strided_slice %64 {offsets = [0, 64], sizes = [2, 32], strides = [1, 1]} : vector<2x128xf32> to vector<2x32xf32>
    %74 = math.tanh %73 : vector<2x32xf32>
    %75 = arith.mulf %71, %52 : vector<2x32xf32>
    %76 = arith.mulf %70, %74 : vector<2x32xf32>
    %77 = arith.addf %75, %76 : vector<2x32xf32>
    %78 = math.tanh %77 : vector<2x32xf32>
    %79 = arith.mulf %72, %78 : vector<2x32xf32>
    %80 = arith.index_cast %c2_i32_26 : i32 to index
    %c0_33 = arith.constant 0 : index
    %c0_34 = arith.constant 0 : index
    %81 = vector.load %arg13[%80, %c0_33, %c0_34] : memref<8x2x32xf32, #tpu.memory_space<vmem>>, vector<1x2x32xf32>
    %82 = vector.shape_cast %81 : vector<1x2x32xf32> to vector<2x32xf32>
    %83 = vector.shape_cast %79 : vector<2x32xf32> to vector<1x2x32xf32>
    tpu.vector_store %arg13[%80, %c0_33, %c0_34], %83 {strides = array<i32>} : memref<8x2x32xf32, #tpu.memory_space<vmem>>, vector<1x2x32xf32>,
    %c3_i32 = arith.constant 3 : i32
    %c2_i32_35 = arith.constant 2 : i32
    %84 = arith.muli %c3_i32, %c2_i32_35 : i32
    %85 = arith.index_cast %84 : i32 to index
    %c0_36 = arith.constant 0 : index
    %86 = vector.load %arg12[%85, %c0_36] : memref<16x128xf32, #tpu.memory_space<vmem>>, vector<2x128xf32>
    %c0_37 = arith.constant 0 : index
    %c0_38 = arith.constant 0 : index
    %87 = vector.load %arg5[%c0_37, %c0_38] : memref<32x128xf32, #tpu.memory_space<vmem>>, vector<32x128xf32>
    %cst_39 = arith.constant dense<0.000000e+00> : vector<2x128xf32>
    %88 = tpu.matmul %79, %87, %cst_39 {dimension_numbers = #tpu.dot_dimension_numbers<[1], [0], [0], [1], [0, 0, 1, 1], [], []>} : vector<2x32xf32>, vector<32x128xf32>, vector<2x128xf32> -> vector<2x128xf32>
    %89 = arith.addf %86, %88 : vector<2x128xf32>
    %90 = arith.negf %89 : vector<2x128xf32>
    %91 = math.exp %90 : vector<2x128xf32>
    %cst_40 = arith.constant 1.000000e+00 : f32
    %92 = vector.broadcast %cst_40 : f32 to vector<2x128xf32>
    %93 = arith.addf %92, %91 : vector<2x128xf32>
    %94 = arith.divf %92, %93 : vector<2x128xf32>
    %95 = vector.extract_strided_slice %94 {offsets = [0, 0], sizes = [2, 32], strides = [1, 1]} : vector<2x128xf32> to vector<2x32xf32>
    %96 = vector.extract_strided_slice %94 {offsets = [0, 32], sizes = [2, 32], strides = [1, 1]} : vector<2x128xf32> to vector<2x32xf32>
    %97 = vector.extract_strided_slice %94 {offsets = [0, 96], sizes = [2, 32], strides = [1, 1]} : vector<2x128xf32> to vector<2x32xf32>
    %98 = vector.extract_strided_slice %89 {offsets = [0, 64], sizes = [2, 32], strides = [1, 1]} : vector<2x128xf32> to vector<2x32xf32>
    %99 = math.tanh %98 : vector<2x32xf32>
    %100 = arith.mulf %96, %77 : vector<2x32xf32>
    %101 = arith.mulf %95, %99 : vector<2x32xf32>
    %102 = arith.addf %100, %101 : vector<2x32xf32>
    %103 = math.tanh %102 : vector<2x32xf32>
    %104 = arith.mulf %97, %103 : vector<2x32xf32>
    %105 = arith.index_cast %c3_i32 : i32 to index
    %c0_41 = arith.constant 0 : index
    %c0_42 = arith.constant 0 : index
    %106 = vector.load %arg13[%105, %c0_41, %c0_42] : memref<8x2x32xf32, #tpu.memory_space<vmem>>, vector<1x2x32xf32>
    %107 = vector.shape_cast %106 : vector<1x2x32xf32> to vector<2x32xf32>
    %108 = vector.shape_cast %104 : vector<2x32xf32> to vector<1x2x32xf32>
    tpu.vector_store %arg13[%105, %c0_41, %c0_42], %108 {strides = array<i32>} : memref<8x2x32xf32, #tpu.memory_space<vmem>>, vector<1x2x32xf32>,
    %c4_i32 = arith.constant 4 : i32
    %c2_i32_43 = arith.constant 2 : i32
    %109 = arith.muli %c4_i32, %c2_i32_43 : i32
    %110 = arith.index_cast %109 : i32 to index
    %c0_44 = arith.constant 0 : index
    %111 = vector.load %arg12[%110, %c0_44] : memref<16x128xf32, #tpu.memory_space<vmem>>, vector<2x128xf32>
    %c0_45 = arith.constant 0 : index
    %c0_46 = arith.constant 0 : index
    %112 = vector.load %arg5[%c0_45, %c0_46] : memref<32x128xf32, #tpu.memory_space<vmem>>, vector<32x128xf32>
    %cst_47 = arith.constant dense<0.000000e+00> : vector<2x128xf32>
    %113 = tpu.matmul %104, %112, %cst_47 {dimension_numbers = #tpu.dot_dimension_numbers<[1], [0], [0], [1], [0, 0, 1, 1], [], []>} : vector<2x32xf32>, vector<32x128xf32>, vector<2x128xf32> -> vector<2x128xf32>
    %114 = arith.addf %111, %113 : vector<2x128xf32>
    %115 = arith.negf %114 : vector<2x128xf32>
    %116 = math.exp %115 : vector<2x128xf32>
    %cst_48 = arith.constant 1.000000e+00 : f32
    %117 = vector.broadcast %cst_48 : f32 to vector<2x128xf32>
    %118 = arith.addf %117, %116 : vector<2x128xf32>
    %119 = arith.divf %117, %118 : vector<2x128xf32>
    %120 = vector.extract_strided_slice %119 {offsets = [0, 0], sizes = [2, 32], strides = [1, 1]} : vector<2x128xf32> to vector<2x32xf32>
    %121 = vector.extract_strided_slice %119 {offsets = [0, 32], sizes = [2, 32], strides = [1, 1]} : vector<2x128xf32> to vector<2x32xf32>
    %122 = vector.extract_strided_slice %119 {offsets = [0, 96], sizes = [2, 32], strides = [1, 1]} : vector<2x128xf32> to vector<2x32xf32>
    %123 = vector.extract_strided_slice %114 {offsets = [0, 64], sizes = [2, 32], strides = [1, 1]} : vector<2x128xf32> to vector<2x32xf32>
    %124 = math.tanh %123 : vector<2x32xf32>
    %125 = arith.mulf %121, %102 : vector<2x32xf32>
    %126 = arith.mulf %120, %124 : vector<2x32xf32>
    %127 = arith.addf %125, %126 : vector<2x32xf32>
    %128 = math.tanh %127 : vector<2x32xf32>
    %129 = arith.mulf %122, %128 : vector<2x32xf32>
    %130 = arith.index_cast %c4_i32 : i32 to index
    %c0_49 = arith.constant 0 : index
    %c0_50 = arith.constant 0 : index
    %131 = vector.load %arg13[%130, %c0_49, %c0_50] : memref<8x2x32xf32, #tpu.memory_space<vmem>>, vector<1x2x32xf32>
    %132 = vector.shape_cast %131 : vector<1x2x32xf32> to vector<2x32xf32>
    %133 = vector.shape_cast %129 : vector<2x32xf32> to vector<1x2x32xf32>
    tpu.vector_store %arg13[%130, %c0_49, %c0_50], %133 {strides = array<i32>} : memref<8x2x32xf32, #tpu.memory_space<vmem>>, vector<1x2x32xf32>,
    %c5_i32 = arith.constant 5 : i32
    %c2_i32_51 = arith.constant 2 : i32
    %134 = arith.muli %c5_i32, %c2_i32_51 : i32
    %135 = arith.index_cast %134 : i32 to index
    %c0_52 = arith.constant 0 : index
    %136 = vector.load %arg12[%135, %c0_52] : memref<16x128xf32, #tpu.memory_space<vmem>>, vector<2x128xf32>
    %c0_53 = arith.constant 0 : index
    %c0_54 = arith.constant 0 : index
    %137 = vector.load %arg5[%c0_53, %c0_54] : memref<32x128xf32, #tpu.memory_space<vmem>>, vector<32x128xf32>
    %cst_55 = arith.constant dense<0.000000e+00> : vector<2x128xf32>
    %138 = tpu.matmul %129, %137, %cst_55 {dimension_numbers = #tpu.dot_dimension_numbers<[1], [0], [0], [1], [0, 0, 1, 1], [], []>} : vector<2x32xf32>, vector<32x128xf32>, vector<2x128xf32> -> vector<2x128xf32>
    %139 = arith.addf %136, %138 : vector<2x128xf32>
    %140 = arith.negf %139 : vector<2x128xf32>
    %141 = math.exp %140 : vector<2x128xf32>
    %cst_56 = arith.constant 1.000000e+00 : f32
    %142 = vector.broadcast %cst_56 : f32 to vector<2x128xf32>
    %143 = arith.addf %142, %141 : vector<2x128xf32>
    %144 = arith.divf %142, %143 : vector<2x128xf32>
    %145 = vector.extract_strided_slice %144 {offsets = [0, 0], sizes = [2, 32], strides = [1, 1]} : vector<2x128xf32> to vector<2x32xf32>
    %146 = vector.extract_strided_slice %144 {offsets = [0, 32], sizes = [2, 32], strides = [1, 1]} : vector<2x128xf32> to vector<2x32xf32>
    %147 = vector.extract_strided_slice %144 {offsets = [0, 96], sizes = [2, 32], strides = [1, 1]} : vector<2x128xf32> to vector<2x32xf32>
    %148 = vector.extract_strided_slice %139 {offsets = [0, 64], sizes = [2, 32], strides = [1, 1]} : vector<2x128xf32> to vector<2x32xf32>
    %149 = math.tanh %148 : vector<2x32xf32>
    %150 = arith.mulf %146, %127 : vector<2x32xf32>
    %151 = arith.mulf %145, %149 : vector<2x32xf32>
    %152 = arith.addf %150, %151 : vector<2x32xf32>
    %153 = math.tanh %152 : vector<2x32xf32>
    %154 = arith.mulf %147, %153 : vector<2x32xf32>
    %155 = arith.index_cast %c5_i32 : i32 to index
    %c0_57 = arith.constant 0 : index
    %c0_58 = arith.constant 0 : index
    %156 = vector.load %arg13[%155, %c0_57, %c0_58] : memref<8x2x32xf32, #tpu.memory_space<vmem>>, vector<1x2x32xf32>
    %157 = vector.shape_cast %156 : vector<1x2x32xf32> to vector<2x32xf32>
    %158 = vector.shape_cast %154 : vector<2x32xf32> to vector<1x2x32xf32>
    tpu.vector_store %arg13[%155, %c0_57, %c0_58], %158 {strides = array<i32>} : memref<8x2x32xf32, #tpu.memory_space<vmem>>, vector<1x2x32xf32>,
    %c6_i32 = arith.constant 6 : i32
    %c2_i32_59 = arith.constant 2 : i32
    %159 = arith.muli %c6_i32, %c2_i32_59 : i32
    %160 = arith.index_cast %159 : i32 to index
    %c0_60 = arith.constant 0 : index
    %161 = vector.load %arg12[%160, %c0_60] : memref<16x128xf32, #tpu.memory_space<vmem>>, vector<2x128xf32>
    %c0_61 = arith.constant 0 : index
    %c0_62 = arith.constant 0 : index
    %162 = vector.load %arg5[%c0_61, %c0_62] : memref<32x128xf32, #tpu.memory_space<vmem>>, vector<32x128xf32>
    %cst_63 = arith.constant dense<0.000000e+00> : vector<2x128xf32>
    %163 = tpu.matmul %154, %162, %cst_63 {dimension_numbers = #tpu.dot_dimension_numbers<[1], [0], [0], [1], [0, 0, 1, 1], [], []>} : vector<2x32xf32>, vector<32x128xf32>, vector<2x128xf32> -> vector<2x128xf32>
    %164 = arith.addf %161, %163 : vector<2x128xf32>
    %165 = arith.negf %164 : vector<2x128xf32>
    %166 = math.exp %165 : vector<2x128xf32>
    %cst_64 = arith.constant 1.000000e+00 : f32
    %167 = vector.broadcast %cst_64 : f32 to vector<2x128xf32>
    %168 = arith.addf %167, %166 : vector<2x128xf32>
    %169 = arith.divf %167, %168 : vector<2x128xf32>
    %170 = vector.extract_strided_slice %169 {offsets = [0, 0], sizes = [2, 32], strides = [1, 1]} : vector<2x128xf32> to vector<2x32xf32>
    %171 = vector.extract_strided_slice %169 {offsets = [0, 32], sizes = [2, 32], strides = [1, 1]} : vector<2x128xf32> to vector<2x32xf32>
    %172 = vector.extract_strided_slice %169 {offsets = [0, 96], sizes = [2, 32], strides = [1, 1]} : vector<2x128xf32> to vector<2x32xf32>
    %173 = vector.extract_strided_slice %164 {offsets = [0, 64], sizes = [2, 32], strides = [1, 1]} : vector<2x128xf32> to vector<2x32xf32>
    %174 = math.tanh %173 : vector<2x32xf32>
    %175 = arith.mulf %171, %152 : vector<2x32xf32>
    %176 = arith.mulf %170, %174 : vector<2x32xf32>
    %177 = arith.addf %175, %176 : vector<2x32xf32>
    %178 = math.tanh %177 : vector<2x32xf32>
    %179 = arith.mulf %172, %178 : vector<2x32xf32>
    %180 = arith.index_cast %c6_i32 : i32 to index
    %c0_65 = arith.constant 0 : index
    %c0_66 = arith.constant 0 : index
    %181 = vector.load %arg13[%180, %c0_65, %c0_66] : memref<8x2x32xf32, #tpu.memory_space<vmem>>, vector<1x2x32xf32>
    %182 = vector.shape_cast %181 : vector<1x2x32xf32> to vector<2x32xf32>
    %183 = vector.shape_cast %179 : vector<2x32xf32> to vector<1x2x32xf32>
    tpu.vector_store %arg13[%180, %c0_65, %c0_66], %183 {strides = array<i32>} : memref<8x2x32xf32, #tpu.memory_space<vmem>>, vector<1x2x32xf32>,
    %c7_i32 = arith.constant 7 : i32
    %c2_i32_67 = arith.constant 2 : i32
    %184 = arith.muli %c7_i32, %c2_i32_67 : i32
    %185 = arith.index_cast %184 : i32 to index
    %c0_68 = arith.constant 0 : index
    %186 = vector.load %arg12[%185, %c0_68] : memref<16x128xf32, #tpu.memory_space<vmem>>, vector<2x128xf32>
    %c0_69 = arith.constant 0 : index
    %c0_70 = arith.constant 0 : index
    %187 = vector.load %arg5[%c0_69, %c0_70] : memref<32x128xf32, #tpu.memory_space<vmem>>, vector<32x128xf32>
    %cst_71 = arith.constant dense<0.000000e+00> : vector<2x128xf32>
    %188 = tpu.matmul %179, %187, %cst_71 {dimension_numbers = #tpu.dot_dimension_numbers<[1], [0], [0], [1], [0, 0, 1, 1], [], []>} : vector<2x32xf32>, vector<32x128xf32>, vector<2x128xf32> -> vector<2x128xf32>
    %189 = arith.addf %186, %188 : vector<2x128xf32>
    %190 = arith.negf %189 : vector<2x128xf32>
    %191 = math.exp %190 : vector<2x128xf32>
    %cst_72 = arith.constant 1.000000e+00 : f32
    %192 = vector.broadcast %cst_72 : f32 to vector<2x128xf32>
    %193 = arith.addf %192, %191 : vector<2x128xf32>
    %194 = arith.divf %192, %193 : vector<2x128xf32>
    %195 = vector.extract_strided_slice %194 {offsets = [0, 0], sizes = [2, 32], strides = [1, 1]} : vector<2x128xf32> to vector<2x32xf32>
    %196 = vector.extract_strided_slice %194 {offsets = [0, 32], sizes = [2, 32], strides = [1, 1]} : vector<2x128xf32> to vector<2x32xf32>
    %197 = vector.extract_strided_slice %194 {offsets = [0, 96], sizes = [2, 32], strides = [1, 1]} : vector<2x128xf32> to vector<2x32xf32>
    %198 = vector.extract_strided_slice %189 {offsets = [0, 64], sizes = [2, 32], strides = [1, 1]} : vector<2x128xf32> to vector<2x32xf32>
    %199 = math.tanh %198 : vector<2x32xf32>
    %200 = arith.mulf %196, %177 : vector<2x32xf32>
    %201 = arith.mulf %195, %199 : vector<2x32xf32>
    %202 = arith.addf %200, %201 : vector<2x32xf32>
    %203 = math.tanh %202 : vector<2x32xf32>
    %204 = arith.mulf %197, %203 : vector<2x32xf32>
    %205 = arith.index_cast %c7_i32 : i32 to index
    %c0_73 = arith.constant 0 : index
    %c0_74 = arith.constant 0 : index
    %206 = vector.load %arg13[%205, %c0_73, %c0_74] : memref<8x2x32xf32, #tpu.memory_space<vmem>>, vector<1x2x32xf32>
    %207 = vector.shape_cast %206 : vector<1x2x32xf32> to vector<2x32xf32>
    %208 = vector.shape_cast %204 : vector<2x32xf32> to vector<1x2x32xf32>
    tpu.vector_store %arg13[%205, %c0_73, %c0_74], %208 {strides = array<i32>} : memref<8x2x32xf32, #tpu.memory_space<vmem>>, vector<1x2x32xf32>,
    %c8_i32 = arith.constant 8 : i32
    %c0_75 = arith.constant 0 : index
    %c0_76 = arith.constant 0 : index
    %209 = vector.load %arg10[%c0_75, %c0_76] : memref<2x32xf32, #tpu.memory_space<vmem>>, vector<2x32xf32>
    tpu.vector_store %arg10[%c0_75, %c0_76], %204 {strides = array<i32>} : memref<2x32xf32, #tpu.memory_space<vmem>>, vector<2x32xf32>,
    %c0_77 = arith.constant 0 : index
    %c0_78 = arith.constant 0 : index
    %210 = vector.load %arg11[%c0_77, %c0_78] : memref<2x32xf32, #tpu.memory_space<vmem>>, vector<2x32xf32>
    tpu.vector_store %arg11[%c0_77, %c0_78], %202 {strides = array<i32>} : memref<2x32xf32, #tpu.memory_space<vmem>>, vector<2x32xf32>,
    %c0_79 = arith.constant 0 : index
    %c0_80 = arith.constant 0 : index
    %c0_81 = arith.constant 0 : index
    %211 = vector.load %arg13[%c0_79, %c0_80, %c0_81] : memref<8x2x32xf32, #tpu.memory_space<vmem>>, vector<8x2x32xf32>
    %c0_82 = arith.constant 0 : index
    %c0_83 = arith.constant 0 : index
    %212 = vector.load %arg7[%c0_82, %c0_83] : memref<32x128xf32, #tpu.memory_space<vmem>>, vector<32x128xf32>
    %c0_84 = arith.constant 0 : index
    %c0_85 = arith.constant 0 : index
    %213 = vector.load %arg8[%c0_84, %c0_85] : memref<1x128xf32, #tpu.memory_space<vmem>>, vector<1x128xf32>
    %214 = vector.extract_strided_slice %211 {offsets = [0, 0, 0], sizes = [8, 1, 32], strides = [1, 1, 1]} : vector<8x2x32xf32> to vector<8x1x32xf32>
    %215 = vector.shape_cast %214 : vector<8x1x32xf32> to vector<8x32xf32>
    %cst_86 = arith.constant dense<0.000000e+00> : vector<8x128xf32>
    %216 = tpu.matmul %215, %212, %cst_86 {dimension_numbers = #tpu.dot_dimension_numbers<[1], [0], [0], [1], [0, 0, 1, 1], [], []>} : vector<8x32xf32>, vector<32x128xf32>, vector<8x128xf32> -> vector<8x128xf32>
    %217 = vector.broadcast %213 : vector<1x128xf32> to vector<8x128xf32>
    %218 = arith.addf %216, %217 : vector<8x128xf32>
    %c0_87 = arith.constant 0 : index
    %c0_88 = arith.constant 0 : index
    %c0_89 = arith.constant 0 : index
    %219 = vector.load %arg9[%c0_87, %c0_88, %c0_89] : memref<2x8x128xf32, #tpu.memory_space<vmem>>, vector<1x8x128xf32>
    %220 = vector.shape_cast %219 : vector<1x8x128xf32> to vector<8x128xf32>
    %221 = vector.shape_cast %218 : vector<8x128xf32> to vector<1x8x128xf32>
    tpu.vector_store %arg9[%c0_87, %c0_88, %c0_89], %221 {strides = array<i32>} : memref<2x8x128xf32, #tpu.memory_space<vmem>>, vector<1x8x128xf32>,
    %222 = vector.extract_strided_slice %211 {offsets = [0, 1, 0], sizes = [8, 1, 32], strides = [1, 1, 1]} : vector<8x2x32xf32> to vector<8x1x32xf32>
    %223 = vector.shape_cast %222 : vector<8x1x32xf32> to vector<8x32xf32>
    %cst_90 = arith.constant dense<0.000000e+00> : vector<8x128xf32>
    %224 = tpu.matmul %223, %212, %cst_90 {dimension_numbers = #tpu.dot_dimension_numbers<[1], [0], [0], [1], [0, 0, 1, 1], [], []>} : vector<8x32xf32>, vector<32x128xf32>, vector<8x128xf32> -> vector<8x128xf32>
    %225 = vector.broadcast %213 : vector<1x128xf32> to vector<8x128xf32>
    %226 = arith.addf %224, %225 : vector<8x128xf32>
    %c1 = arith.constant 1 : index
    %c0_91 = arith.constant 0 : index
    %c0_92 = arith.constant 0 : index
    %227 = vector.load %arg9[%c1, %c0_91, %c0_92] : memref<2x8x128xf32, #tpu.memory_space<vmem>>, vector<1x8x128xf32>
    %228 = vector.shape_cast %227 : vector<1x8x128xf32> to vector<8x128xf32>
    %229 = vector.shape_cast %226 : vector<8x128xf32> to vector<1x8x128xf32>
    tpu.vector_store %arg9[%c1, %c0_91, %c0_92], %229 {strides = array<i32>} : memref<2x8x128xf32, #tpu.memory_space<vmem>>, vector<1x8x128xf32>,
    return
  }
  func.func @transform_0(%arg0: i32) -> (i32, i32) {
    %c0_i32 = arith.constant 0 : i32
    %c0_i32_0 = arith.constant 0 : i32
    %c0_i32_1 = arith.constant 0 : i32
    return %c0_i32, %c0_i32_0 : i32, i32
  }
  func.func @transform_1(%arg0: i32) -> (i32, i32) {
    %c0_i32 = arith.constant 0 : i32
    %c0_i32_0 = arith.constant 0 : i32
    %c0_i32_1 = arith.constant 0 : i32
    return %c0_i32, %c0_i32_0 : i32, i32
  }
  func.func @transform_2(%arg0: i32) -> (i32, i32) {
    %c0_i32 = arith.constant 0 : i32
    %c0_i32_0 = arith.constant 0 : i32
    %c0_i32_1 = arith.constant 0 : i32
    return %c0_i32, %c0_i32_0 : i32, i32
  }
  func.func @transform_3(%arg0: i32) -> (i32, i32) {
    %c0_i32 = arith.constant 0 : i32
    %c0_i32_0 = arith.constant 0 : i32
    %c0_i32_1 = arith.constant 0 : i32
    return %c0_i32, %c0_i32_0 : i32, i32
  }
  func.func @transform_4(%arg0: i32) -> (i32, i32) {
    %c0_i32 = arith.constant 0 : i32
    %c0_i32_0 = arith.constant 0 : i32
    %c0_i32_1 = arith.constant 0 : i32
    return %c0_i32, %c0_i32_0 : i32, i32
  }
  func.func @transform_5(%arg0: i32) -> (i32, i32) {
    %c0_i32 = arith.constant 0 : i32
    %c0_i32_0 = arith.constant 0 : i32
    %c0_i32_1 = arith.constant 0 : i32
    return %c0_i32, %c0_i32_0 : i32, i32
  }
  func.func @transform_6(%arg0: i32) -> (i32, i32) {
    %c0_i32 = arith.constant 0 : i32
    %c0_i32_0 = arith.constant 0 : i32
    %c0_i32_1 = arith.constant 0 : i32
    return %c0_i32, %c0_i32_0 : i32, i32
  }
  func.func @transform_7(%arg0: i32) -> (i32, i32) {
    %c0_i32 = arith.constant 0 : i32
    %c0_i32_0 = arith.constant 0 : i32
    %c0_i32_1 = arith.constant 0 : i32
    return %c0_i32, %c0_i32_0 : i32, i32
  }
  func.func @transform_8(%arg0: i32) -> (i32, i32, i32) {
    %c0_i32 = arith.constant 0 : i32
    %c0_i32_0 = arith.constant 0 : i32
    %c0_i32_1 = arith.constant 0 : i32
    %c0_i32_2 = arith.constant 0 : i32
    return %c0_i32, %c0_i32_0, %c0_i32_1 : i32, i32, i32
  }
  func.func @transform_9(%arg0: i32) -> (i32, i32) {
    %c0_i32 = arith.constant 0 : i32
    %c0_i32_0 = arith.constant 0 : i32
    %c0_i32_1 = arith.constant 0 : i32
    return %c0_i32, %c0_i32_0 : i32, i32
  }
  func.func @transform_10(%arg0: i32) -> (i32, i32) {
    %c0_i32 = arith.constant 0 : i32
    %c0_i32_0 = arith.constant 0 : i32
    %c0_i32_1 = arith.constant 0 : i32
    return %c0_i32, %c0_i32_0 : i32, i32
  }
}

</mosaic_0001>

<bundles_post_ra>
// kernel: tpu_custom_call.1
= control target key start
LH: loop header
LB: loop body
LE: loop exit
PB: predicated region body
PF: predicated region fallthrough
CT: control target
= control target key end

     0   :  { %16 = vsyncpa [#allocation5], 0  ;;  %s2140_s0 = inlined_call_operand.hbm [shape: f32[16,32], index: 0, kind: input, shape index: {}]   ;;  %s2141_s1 = inlined_call_operand.vmem [shape: f32[2,32], index: 1, kind: input, shape index: {}]   ;;  %s2142_s2 = inlined_call_operand.vmem [shape: f32[2,32], index: 2, kind: input, shape index: {}]   ;;  %s2143_s3 = inlined_call_operand.hbm [shape: f32[32,128], index: 3, kind: input, shape index: {}]   ;;  %s2144_s4 = inlined_call_operand.hbm [shape: f32[32,128], index: 4, kind: input, shape index: {}]   ;;  %s2145_s5 = inlined_call_operand.vmem [shape: f32[1,128], index: 5, kind: input, shape index: {}]   ;;  %s2146_s6 = inlined_call_operand.hbm [shape: f32[32,128], index: 6, kind: input, shape index: {}]   ;;  %s2147_s7 = inlined_call_operand.vmem [shape: f32[1,128], index: 7, kind: input, shape index: {}]   ;;  %s2148_s8 = inlined_call_operand.hbm [shape: f32[2,8,128], index: 8, kind: output, shape index: {0}]   ;;  %s2149_s9 = inlined_call_operand.hbm [shape: f32[2,32], index: 9, kind: output, shape index: {1}]   ;;  %s2150_s10 = inlined_call_operand.hbm [shape: f32[2,32], index: 10, kind: output, shape index: {2}]  }
   0x1   :  { %17 = vsyncpa [#allocation8], 0 }
   0x2   :  { %18 = vsyncpa [#allocation11], 0 }
   0x3   :  { %19 = vsyncpa [#allocation6], 0 }
   0x4   :  { %20 = vsyncpa [#allocation14], 0  ;;  %s1828_s13 = smov [#allocation7]   ;;  %s1829_s15 = smov [#allocation4]  }
   0x5   :  { %s42_s14 = sshll.u32 %s1828_s13, 4  ;;  %s26_s16 = sshll.u32 %s1829_s15, 4  ;;  %s43_s14 = int_to_ptr.vmem [resolvable:$true] %s42_s14  ;;  %s1898_s16 = int_to_ptr.vmem [resolvable:$true] %s26_s16 }
   0x6   :  { %s1664_s19 = scalar_lea.hbm %s2143_s3, 512 }
   0x7   :  { %p1665_p0 = scmp.ne.s32.totalorder %s2143_s3, %s1664_s19  ;;  %p1668_p1 = scmp.lt.u32.totalorder %s1664_s19, %s2143_s3 }
   0x9   :  { %p1670_p2 = pnand %p1668_p1, %p1665_p0 }
   0xb   :  { %1673 = shalt.err (!%p1670_p2)
}
   0xc   :  { %s1674_s24 = scalar_lea.vmem %s43_s14, 512  ;;  %p1679_p4 = scmp.lt.s32.totalorder %s43_s14, %s43_s14 }
   0xd   :  { %p1675_p3 = scmp.ne.s32.totalorder %s43_s14, %s1674_s24  ;;  %p1680_p5 = scmp.lt.s32.totalorder %s1674_s24, %s1674_s24 }
   0xf   :  { %p1681_p6 = por %p1680_p5, %p1679_p4 }
  0x11   :  { %p1682_p7 = pnand %p1681_p6, %p1675_p3 }
  0x13   :  { %1685 = shalt.err (!%p1682_p7)
}
  0x14   :  { %s1830_s25 = smov 128   ;;  %s1831_s26 = smov 8  }
  0x15   :  { %48 = dma.hbm_to_vmem [thread:$0]  %s2143_s3, 512, %s43_s14, [#allocation8], %s1830_s25, %s1830_s25, %s1831_s26  }
  0x16   :  { %s1686_s11 = scalar_lea.hbm %s2140_s0, 256 }
  0x17   :  { %p1687_p8 = scmp.ne.s32.totalorder %s2140_s0, %s1686_s11  ;;  %p1690_p9 = scmp.lt.u32.totalorder %s1686_s11, %s2140_s0 }
  0x19   :  { %p1692_p10 = pnand %p1690_p9, %p1687_p8 }
  0x1b   :  { %1695 = shalt.err (!%p1692_p10)
}
  0x1c   :  { %s1696_s18 = scalar_lea.vmem %s1898_s16, 256  ;;  %p1701_p12 = scmp.lt.s32.totalorder %s1898_s16, %s1898_s16 }
  0x1d   :  { %p1697_p11 = scmp.ne.s32.totalorder %s1898_s16, %s1696_s18  ;;  %p1702_p13 = scmp.lt.s32.totalorder %s1696_s18, %s1696_s18 }
  0x1f   :  { %p1703_p0 = por %p1702_p13, %p1701_p12 }
  0x21   :  { %p1704_p1 = pnand %p1703_p0, %p1697_p11 }
  0x23   :  { %1707 = shalt.err (!%p1704_p1)
}
  0x24   :  { %32 = dma.hbm_to_vmem [thread:$0]  %s2140_s0, 256, %s1898_s16, [#allocation5], %s1830_s25, %s1830_s25, %s1831_s26  }
  0x25   :  { %s1832_s19 = smov [#allocation9]   ;;  %s1833_s21 = smov [#allocation10]  }
  0x26   :  { %s54_s20 = sshll.u32 %s1832_s19, 4  ;;  %s68_s22 = sshll.u32 %s1833_s21, 4  ;;  %s55_s20 = int_to_ptr.vmem [resolvable:$true] %s54_s20  ;;  %s1935_s22 = int_to_ptr.vmem [resolvable:$true] %s68_s22 }
  0x27   :  { %s1708_s27 = scalar_lea.hbm %s2144_s4, 512 }
  0x28   :  { %p1709_p2 = scmp.ne.s32.totalorder %s2144_s4, %s1708_s27  ;;  %p1712_p3 = scmp.lt.u32.totalorder %s1708_s27, %s2144_s4 }
  0x2a   :  { %p1714_p4 = pnand %p1712_p3, %p1709_p2 }
  0x2c   :  { %1717 = shalt.err (!%p1714_p4)
}
  0x2d   :  { %s1718_s0 = scalar_lea.vmem %s55_s20, 512  ;;  %p1723_p6 = scmp.lt.s32.totalorder %s55_s20, %s55_s20 }
  0x2e   :  { %p1719_p5 = scmp.ne.s32.totalorder %s55_s20, %s1718_s0  ;;  %p1724_p7 = scmp.lt.s32.totalorder %s1718_s0, %s1718_s0 }
  0x30   :  { %p1725_p8 = por %p1724_p7, %p1723_p6 }
  0x32   :  { %p1726_p9 = pnand %p1725_p8, %p1719_p5 }
  0x34   :  { %1729 = shalt.err (!%p1726_p9)
}
  0x35   :  { %60 = dma.hbm_to_vmem [thread:$0]  %s2144_s4, 512, %s55_s20, [#allocation8], %s1830_s25, %s1830_s25, %s1831_s26  }
  0x36   :  { %s1730_s17 = scalar_lea.hbm %s2146_s6, 512 }
  0x37   :  { %p1731_p10 = scmp.ne.s32.totalorder %s2146_s6, %s1730_s17  ;;  %p1734_p11 = scmp.lt.u32.totalorder %s1730_s17, %s2146_s6 }
  0x39   :  { %p1736_p12 = pnand %p1734_p11, %p1731_p10 }
  0x3b   :  { %1739 = shalt.err (!%p1736_p12)
}
  0x3c   :  { %s1740_s21 = scalar_lea.vmem %s1935_s22, 512  ;;  %p1745_p0 = scmp.lt.s32.totalorder %s1935_s22, %s1935_s22 }
  0x3d   :  { %p1741_p13 = scmp.ne.s32.totalorder %s1935_s22, %s1740_s21  ;;  %p1746_p1 = scmp.lt.s32.totalorder %s1740_s21, %s1740_s21 }
  0x3f   :  { %p1747_p2 = por %p1746_p1, %p1745_p0 }
  0x41   :  { %p1748_p3 = pnand %p1747_p2, %p1741_p13 }
  0x43   :  { %1751 = shalt.err (!%p1748_p3)
}
  0x44   :  { %74 = dma.hbm_to_vmem [thread:$0]  %s2146_s6, 512, %s1935_s22, [#allocation11], %s1830_s25, %s1830_s25, %s1831_s26  }
  0x45   :  { %1818 = dma.done.wait [#allocation5], 256  }
  0x46   :  { %1819 = vsyncadd [#allocation5], 4294967040 }
  0x47   :  { %1820 = dma.done.wait [#allocation8], 1024  }
  0x48   :  { %1821 = vsyncadd [#allocation8], 4294966272 }
  0x49   :  { %1822 = dma.done.wait [#allocation11], 512  }
  0x4a   :  { %1823 = vsyncadd [#allocation11], 4294966784  ;;  %v1834_v0 = vmov 0.0|0.0   ;;  %vm1835_vm0 = vmmov 0   ;;  %v1836_v1 = vmov 0.0   ;;  %vm102_vm1 = vcmask 261120  }
  0x4b   :  { %1525 = vmatprep.subr.bf16.mxu1 %v1834_v0  ;;  %1415 = vmatprep.mubr.msk.f32.mxu1 %vm1835_vm0, %v1836_v1  ;;  %v91_v2 = vld [vmem:[#allocation7] sm:$0xff]  ;;  %v92_v3 = vld [vmem:[#allocation7 + $0x8] sm:$0xff]  ;;  %v93_v4 = vld [vmem:[#allocation7 + $0x10] sm:$0xff]  ;;  %s1837_s24 = smov 64   ;;  %vm299_vm2 = vcmask 254976   ;;  %vm1091_vm3 = vcmask 1041409  }
  0x4c   :  { %v1517_v5 = vpack.c.bf16 %v92_v3, %v91_v2  ;;  %v94_v6 = vld [vmem:[#allocation7 + $0x18] sm:$0xff]  ;;  %v89_v7 = vld [vmem:[#allocation4] sm:$0xff]  ;;  %v189_v9 = vld [vmem:[#allocation9] sm:$0xff]  ;;  %vm1094_vm4 = vcmask 1042434   ;;  %vm1097_vm5 = vcmask 1043459   ;;  %vm1100_vm6 = vcmask 1044484  }
  0x4d   :  { %v1521_v8 = vpack.c.bf16 %v94_v6, %v93_v4  ;;  %1404 = vmatprep.mubr.msk.f32.mxu0 %vm102_vm1, %v89_v7  ;;  %v190_v10 = vld [vmem:[#allocation9 + $0x8] sm:$0xff]  ;;  %v191_v11 = vld [vmem:[#allocation9 + $0x10] sm:$0xff]  ;;  %v192_v13 = vld [vmem:[#allocation9 + $0x18] sm:$0xff]  ;;  %vm1103_vm7 = vcmask 1045509   ;;  %vm1106_vm8 = vcmask 1046534   ;;  %vm1109_vm9 = vcmask 1047559  }
  0x4e   :  { %1518 = vmatprep.subr.bf16.mxu0 %v1517_v5  ;;  %v1976_v12 = vpack.c.bf16 %v190_v10, %v189_v9  ;;  %v1979_v14 = vpack.c.bf16 %v192_v13, %v191_v11  ;;  %v90_v15 = vld [vmem:[#allocation4 + $0x8] sm:$0xff]  ;;  %v186_v16 = vld [vmem:[%s2141_s1] sm:$0x3]  ;;  %s1840_s29 = smov [#allocation13]  }
  0x4f   :  { %1520 = vmatpush3.bf16.msra.mxu0 %v1517_v5  ;;  %v1318_v17 = vld [vmem:[%s2145_s5] ss:$0 sm:$0xff]  ;;  %s1838_s5 = smov 32   ;;  %s1290_s30 = sshll.u32 %s1840_s29, 4  ;;  %s1291_s30 = int_to_ptr.vmem [resolvable:$true] %s1290_s30 }
  0x50   :  { %1522 = vmatprep.subr.bf16.mxu0 %v1521_v8  ;;  %1527 = vmatpush3.bf16.msra.mxu1 %v1976_v12  ;;  %v187_v27 = vld [vmem:[%s2142_s2] sm:$0x3]  ;;  %s1839_s2 = smov 96   ;;  %s1752_s11 = scalar_lea.vmem %s1291_s30, 32 }
  0x51   :  { %1528 = vmatprep.subr.bf16.mxu1 %v1834_v0  ;;  %p1753_p4 = scmp.ne.s32.totalorder %s1291_s30, %s1752_s11  ;;  %p1757_p5 = scmp.lt.s32.totalorder %s1291_s30, %s1291_s30 }
  0x52   :  { %p1758_p6 = scmp.lt.s32.totalorder %s1752_s11, %s1752_s11 }
  0x53   :  { %1524 = vmatpush3.bf16.msra.mxu0 %v1521_v8 }
  0x54   :  { %1530 = vmatpush3.bf16.msra.mxu1 %v1979_v14  ;;  %1531 = vmatprep.subr.bf16.mxu0 %v1834_v0  ;;  %p1759_p7 = por %p1758_p6, %p1757_p5 }
  0x55   :  { %1537 = vmatprep.subr.bf16.mxu1 %v1834_v0 }
  0x56   :  { %1405 = vmatmul.mubr.msk.f32.vlgmr.msra.gmra.mrb[0].mxu0 %vm102_vm1, %v90_v15  ;;  %p1760_p8 = pnand %p1759_p7, %p1753_p4 }
  0x57   :  { %1416 = vmatmul.mubr.msk.f32.vlgmr.msra.gmra.mrb[0].mxu1 %vm102_vm1, %v186_v16  ;;  %1533 = vmatpush3.bf16.msra.mxu0 %v1976_v12 }
  0x58   :  { %1534 = vmatprep.subr.bf16.mxu0 %v1834_v0  ;;  %1426 = vmatprep.mubr.msk.f32.mxu0 %vm1835_vm0, %v1836_v1 }
  0x59   :  { %1539 = vmatpush3.bf16.msra.mxu1 %v1976_v12  ;;  %1437 = vmatprep.mubr.msk.f32.mxu1 %vm1835_vm0, %v1836_v1 }
  0x5a   :  { %1540 = vmatprep.subr.bf16.mxu1 %v1834_v0 }
  0x5b   :  { %1536 = vmatpush3.bf16.msra.mxu0 %v1979_v14 }
  0x5c   :  { %1543 = vmatprep.subr.bf16.mxu0 %v1834_v0 }
  0x5d   :  { %1542 = vmatpush3.bf16.msra.mxu1 %v1979_v14 }
  0x5e   :  { %1549 = vmatprep.subr.bf16.mxu1 %v1834_v0 }
 0x129   :  { %v1406_v18 = vpop.f32.mrb[0].mxu0 }
 0x12a   :  { %v181_v19 = vadd.f32 %v1406_v18, %v1318_v17  ;;  %v175_v20 = vpop.f32.mrb[1].mxu0  ;;  %v262_v21 = vpop.f32.mrb[0].mxu1 }
 0x12b   :  { %v176_v22 = vadd.f32 %v1318_v17, %v175_v20  ;;  %v1417_v23 = vpop.f32.mrb[1].mxu1 }
 0x12c   :  { %185 = vst [vmem:[#allocation2 + $0x8] sm:$0xff] %v181_v19 }
 0x12d   :  { %184 = vst [vmem:[#allocation2] sm:$0xff] %v176_v22 }
 0x134   :  { %v188_v24 = vld [vmem:[#allocation2] sm:$0x3]  ;;  %v301_v42 = vld [vmem:[#allocation2 + $0x2] sm:$0x3]  ;;  %v409_v60 = vld [vmem:[#allocation2 + $0x4] sm:$0x3] }
 0x135   :  { %v266_v25 = vadd.f32 %v262_v21, %v188_v24  ;;  %v517_v18 = vld [vmem:[#allocation2 + $0x6] sm:$0x3] }
 0x137   :  { %1600 = vtanh.f32 %v266_v25  ;;  %v1322_v28 = vmul.f32 -1.442695, %v266_v25 }
 0x139   :  { %1602 = vpow2.f32 %v1322_v28 }
 0x141   :  { %v1601_v26 = vpop.eup %1600 }
 0x142   :  { %280 = vrot.lane.b32.xlu0 %v1601_v26, %s1837_s24 }
 0x143   :  { %v1603_v29 = vpop.eup %1602 }
 0x144   :  { %v270_v30 = vadd.f32 1.0, %v1603_v29 }
 0x146   :  { %275 = vrot.lane.b32.xlu0 %v187_v27, %s1838_s5  ;;  %1604 = vrcp.f32 %v270_v30 }
 0x150   :  { %v1605_v31 = vpop.eup %1604 }
 0x1b4   :  { %v281_v32 = vpop.permute.xlu0 %280 }
 0x1b5   :  { %v283_v33 = vmul.f32 %v1605_v31, %v281_v32 }
 0x1b7   :  { %285 = vrot.lane.b32.xlu1 %v283_v33, %s1838_s5 }
 0x1b8   :  { %v276_v34 = vpop.permute.xlu0 %275 }
 0x1b9   :  { %v278_v35 = vmul.f32 %v1605_v31, %v276_v34 }
 0x229   :  { %v286_v36 = vpop.permute.xlu1 %285 }
 0x22a   :  { %v288_v37 = vadd.f32 %v286_v36, %v278_v35  ;;  %v625_v36 = vld [vmem:[#allocation2 + $0x8] sm:$0x3] }
 0x22c   :  { %1606 = vtanh.f32 %v288_v37 }
 0x236   :  { %v1607_v38 = vpop.eup %1606 }
 0x237   :  { %291 = vrot.lane.b32.xlu1 %v1607_v38, %s1837_s24 }
 0x2a9   :  { %v292_v39 = vpop.permute.xlu1 %291 }
 0x2aa   :  { %v294_v40 = vmul.f32 %v1605_v31, %v292_v39 }
 0x2ac   :  { %296 = vrot.lane.b32.xlu0 %v294_v40, %s1838_s5 }
 0x31e   :  { %v297_v41 = vpop.permute.xlu0 %296 }
 0x31f   :  { %300 = vst.msk [vmem:[#allocation3] sm:$0x3] %vm299_vm2, %v297_v41  ;;  %1427 = vmatmul.mubr.msk.f32.vlgmr.msra.gmra.mrb[2].mxu0 %vm102_vm1, %v297_v41 }
 0x320   :  { %1545 = vmatpush3.bf16.msra.mxu0 %v1976_v12  ;;  %1448 = vmatprep.mubr.msk.f32.mxu0 %vm1835_vm0, %v1836_v1 }
 0x321   :  { %1546 = vmatprep.subr.bf16.mxu0 %v1834_v0 }
 0x324   :  { %1548 = vmatpush3.bf16.msra.mxu0 %v1979_v14 }
 0x325   :  { %1555 = vmatprep.subr.bf16.mxu0 %v1834_v0 }
 0x3f2   :  { %v374_v43 = vpop.f32.mrb[2].mxu0 }
 0x3f3   :  { %v378_v44 = vadd.f32 %v374_v43, %v301_v42  ;;  %v1428_v45 = vpop.f32.mrb[3].mxu0 }
 0x3f5   :  { %1608 = vtanh.f32 %v378_v44  ;;  %v1324_v47 = vmul.f32 -1.442695, %v378_v44 }
 0x3f7   :  { %1610 = vpow2.f32 %v1324_v47 }
 0x3ff   :  { %v1609_v46 = vpop.eup %1608 }
 0x400   :  { %388 = vrot.lane.b32.xlu1 %v1609_v46, %s1837_s24 }
 0x401   :  { %v1611_v48 = vpop.eup %1610 }
 0x402   :  { %v382_v49 = vadd.f32 1.0, %v1611_v48 }
 0x404   :  { %1612 = vrcp.f32 %v382_v49 }
 0x40e   :  { %v1613_v50 = vpop.eup %1612 }
 0x40f   :  { %v386_v53 = vmul.f32 %v1613_v50, %v288_v37 }
 0x472   :  { %v389_v51 = vpop.permute.xlu1 %388 }
 0x473   :  { %v391_v52 = vmul.f32 %v1613_v50, %v389_v51 }
 0x475   :  { %393 = vrot.lane.b32.xlu0 %v391_v52, %s1838_s5 }
 0x4e7   :  { %v394_v54 = vpop.permute.xlu0 %393 }
 0x4e8   :  { %v396_v55 = vadd.f32 %v394_v54, %v386_v53  ;;  %v733_v54 = vld [vmem:[#allocation2 + $0xa] sm:$0x3] }
 0x4ea   :  { %1614 = vtanh.f32 %v396_v55 }
 0x4f4   :  { %v1615_v56 = vpop.eup %1614 }
 0x4f5   :  { %399 = vrot.lane.b32.xlu1 %v1615_v56, %s1837_s24 }
 0x567   :  { %v400_v57 = vpop.permute.xlu1 %399 }
 0x568   :  { %v402_v58 = vmul.f32 %v1613_v50, %v400_v57 }
 0x56a   :  { %404 = vrot.lane.b32.xlu0 %v402_v58, %s1838_s5 }
 0x5dc   :  { %v405_v59 = vpop.permute.xlu0 %404 }
 0x5dd   :  { %408 = vst.msk [vmem:[#allocation3 + $0x2] sm:$0x3] %vm299_vm2, %v405_v59  ;;  %1438 = vmatmul.mubr.msk.f32.vlgmr.msra.gmra.mrb[2].mxu1 %vm102_vm1, %v405_v59 }
 0x5de   :  { %1551 = vmatpush3.bf16.msra.mxu1 %v1976_v12  ;;  %1459 = vmatprep.mubr.msk.f32.mxu1 %vm1835_vm0, %v1836_v1 }
 0x5df   :  { %1552 = vmatprep.subr.bf16.mxu1 %v1834_v0 }
 0x5e2   :  { %1554 = vmatpush3.bf16.msra.mxu1 %v1979_v14 }
 0x5e3   :  { %1561 = vmatprep.subr.bf16.mxu1 %v1834_v0 }
 0x6b0   :  { %v482_v61 = vpop.f32.mrb[2].mxu1 }
 0x6b1   :  { %v486_v62 = vadd.f32 %v482_v61, %v409_v60  ;;  %v1439_v63 = vpop.f32.mrb[3].mxu1 }
 0x6b3   :  { %1616 = vtanh.f32 %v486_v62  ;;  %v1326_v3 = vmul.f32 -1.442695, %v486_v62 }
 0x6b5   :  { %1618 = vpow2.f32 %v1326_v3 }
 0x6bd   :  { %v1617_v2 = vpop.eup %1616 }
 0x6be   :  { %496 = vrot.lane.b32.xlu1 %v1617_v2, %s1837_s24 }
 0x6bf   :  { %v1619_v4 = vpop.eup %1618 }
 0x6c0   :  { %v490_v5 = vadd.f32 1.0, %v1619_v4 }
 0x6c2   :  { %1620 = vrcp.f32 %v490_v5 }
 0x6cc   :  { %v1621_v6 = vpop.eup %1620 }
 0x6cd   :  { %v494_v9 = vmul.f32 %v1621_v6, %v396_v55 }
 0x730   :  { %v497_v7 = vpop.permute.xlu1 %496 }
 0x731   :  { %v499_v8 = vmul.f32 %v1621_v6, %v497_v7 }
 0x733   :  { %501 = vrot.lane.b32.xlu0 %v499_v8, %s1838_s5  ;;  %v841_v8 = vld [vmem:[#allocation2 + $0xc] sm:$0x3] }
 0x7a5   :  { %v502_v10 = vpop.permute.xlu0 %501 }
 0x7a6   :  { %v504_v11 = vadd.f32 %v502_v10, %v494_v9 }
 0x7a8   :  { %1622 = vtanh.f32 %v504_v11 }
 0x7b2   :  { %v1623_v13 = vpop.eup %1622 }
 0x7b3   :  { %507 = vrot.lane.b32.xlu1 %v1623_v13, %s1837_s24 }
 0x825   :  { %v508_v15 = vpop.permute.xlu1 %507 }
 0x826   :  { %v510_v16 = vmul.f32 %v1621_v6, %v508_v15 }
 0x828   :  { %512 = vrot.lane.b32.xlu0 %v510_v16, %s1838_s5 }
 0x89a   :  { %v513_v17 = vpop.permute.xlu0 %512 }
 0x89b   :  { %516 = vst.msk [vmem:[#allocation3 + $0x4] sm:$0x3] %vm299_vm2, %v513_v17  ;;  %1449 = vmatmul.mubr.msk.f32.vlgmr.msra.gmra.mrb[4].mxu0 %vm102_vm1, %v513_v17 }
 0x89c   :  { %1557 = vmatpush3.bf16.msra.mxu0 %v1976_v12  ;;  %1470 = vmatprep.mubr.msk.f32.mxu0 %vm1835_vm0, %v1836_v1 }
 0x89d   :  { %1558 = vmatprep.subr.bf16.mxu0 %v1834_v0 }
 0x8a0   :  { %1560 = vmatpush3.bf16.msra.mxu0 %v1979_v14 }
 0x8a1   :  { %1567 = vmatprep.subr.bf16.mxu0 %v1834_v0 }
 0x96e   :  { %v590_v19 = vpop.f32.mrb[4].mxu0 }
 0x96f   :  { %v594_v20 = vadd.f32 %v590_v19, %v517_v18  ;;  %v1450_v21 = vpop.f32.mrb[5].mxu0 }
 0x971   :  { %1624 = vtanh.f32 %v594_v20  ;;  %v1328_v23 = vmul.f32 -1.442695, %v594_v20 }
 0x973   :  { %1626 = vpow2.f32 %v1328_v23 }
 0x97b   :  { %v1625_v22 = vpop.eup %1624 }
 0x97c   :  { %604 = vrot.lane.b32.xlu1 %v1625_v22, %s1837_s24 }
 0x97d   :  { %v1627_v24 = vpop.eup %1626 }
 0x97e   :  { %v598_v25 = vadd.f32 1.0, %v1627_v24 }
 0x980   :  { %1628 = vrcp.f32 %v598_v25 }
 0x98a   :  { %v1629_v26 = vpop.eup %1628 }
 0x98b   :  { %v602_v29 = vmul.f32 %v1629_v26, %v504_v11 }
 0x9ee   :  { %v605_v27 = vpop.permute.xlu1 %604 }
 0x9ef   :  { %v607_v28 = vmul.f32 %v1629_v26, %v605_v27 }
 0x9f1   :  { %609 = vrot.lane.b32.xlu0 %v607_v28, %s1838_s5  ;;  %v949_v28 = vld [vmem:[#allocation2 + $0xe] sm:$0x3] }
 0xa63   :  { %v610_v30 = vpop.permute.xlu0 %609 }
 0xa64   :  { %v612_v31 = vadd.f32 %v610_v30, %v602_v29 }
 0xa66   :  { %1630 = vtanh.f32 %v612_v31 }
 0xa70   :  { %v1631_v32 = vpop.eup %1630 }
 0xa71   :  { %615 = vrot.lane.b32.xlu1 %v1631_v32, %s1837_s24 }
 0xae3   :  { %v616_v33 = vpop.permute.xlu1 %615 }
 0xae4   :  { %v618_v34 = vmul.f32 %v1629_v26, %v616_v33 }
 0xae6   :  { %620 = vrot.lane.b32.xlu0 %v618_v34, %s1838_s5 }
 0xb58   :  { %v621_v35 = vpop.permute.xlu0 %620 }
 0xb59   :  { %624 = vst.msk [vmem:[#allocation3 + $0x6] sm:$0x3] %vm299_vm2, %v621_v35  ;;  %1460 = vmatmul.mubr.msk.f32.vlgmr.msra.gmra.mrb[4].mxu1 %vm102_vm1, %v621_v35 }
 0xb5a   :  { %1563 = vmatpush3.bf16.msra.mxu1 %v1976_v12  ;;  %1481 = vmatprep.mubr.msk.f32.mxu1 %vm1835_vm0, %v1836_v1 }
 0xb5b   :  { %1564 = vmatprep.subr.bf16.mxu1 %v1834_v0 }
 0xb5e   :  { %1566 = vmatpush3.bf16.msra.mxu1 %v1979_v14 }
 0xb5f   :  { %1573 = vmatprep.subr.bf16.mxu1 %v1834_v0 }
 0xc2c   :  { %v698_v37 = vpop.f32.mrb[4].mxu1 }
 0xc2d   :  { %v702_v38 = vadd.f32 %v698_v37, %v625_v36  ;;  %v1461_v39 = vpop.f32.mrb[5].mxu1 }
 0xc2f   :  { %1632 = vtanh.f32 %v702_v38  ;;  %v1330_v41 = vmul.f32 -1.442695, %v702_v38 }
 0xc31   :  { %1634 = vpow2.f32 %v1330_v41 }
 0xc39   :  { %v1633_v40 = vpop.eup %1632 }
 0xc3a   :  { %712 = vrot.lane.b32.xlu1 %v1633_v40, %s1837_s24 }
 0xc3b   :  { %v1635_v42 = vpop.eup %1634 }
 0xc3c   :  { %v706_v43 = vadd.f32 1.0, %v1635_v42  ;;  %v1071_v42 = vld [vmem:[#allocation10] sm:$0xff] }
 0xc3e   :  { %1636 = vrcp.f32 %v706_v43  ;;  %v1072_v43 = vld [vmem:[#allocation10 + $0x8] sm:$0xff] }
 0xc48   :  { %v1637_v44 = vpop.eup %1636 }
 0xc49   :  { %v710_v47 = vmul.f32 %v1637_v44, %v612_v31 }
 0xcac   :  { %v713_v45 = vpop.permute.xlu1 %712 }
 0xcad   :  { %v715_v46 = vmul.f32 %v1637_v44, %v713_v45  ;;  %v1574_v45 = vpack.c.bf16 %v1072_v43, %v1071_v42 }
 0xcaf   :  { %717 = vrot.lane.b32.xlu0 %v715_v46, %s1838_s5  ;;  %v1074_v46 = vld [vmem:[#allocation10 + $0x18] sm:$0xff] }
 0xd21   :  { %v718_v48 = vpop.permute.xlu0 %717 }
 0xd22   :  { %v720_v49 = vadd.f32 %v718_v48, %v710_v47 }
 0xd24   :  { %1638 = vtanh.f32 %v720_v49 }
 0xd2e   :  { %v1639_v50 = vpop.eup %1638 }
 0xd2f   :  { %723 = vrot.lane.b32.xlu1 %v1639_v50, %s1837_s24 }
 0xda1   :  { %v724_v51 = vpop.permute.xlu1 %723 }
 0xda2   :  { %v726_v52 = vmul.f32 %v1637_v44, %v724_v51  ;;  %v1073_v44 = vld [vmem:[#allocation10 + $0x10] sm:$0xff]  ;;  %v1064_v51 = vld [vmem:[#allocation3 + $0x2] sm:$0x3] }
 0xda3   :  { %v1577_v47 = vpack.c.bf16 %v1074_v46, %v1073_v44 }
 0xda4   :  { %728 = vrot.lane.b32.xlu0 %v726_v52, %s1838_s5  ;;  %v1063_v52 = vld [vmem:[#allocation3] sm:$0x3] }
 0xe16   :  { %v729_v53 = vpop.permute.xlu0 %728 }
 0xe17   :  { %732 = vst.msk [vmem:[#allocation3 + $0x8] sm:$0x3] %vm299_vm2, %v729_v53  ;;  %1471 = vmatmul.mubr.msk.f32.vlgmr.msra.gmra.mrb[6].mxu0 %vm102_vm1, %v729_v53  ;;  %v1065_v53 = vld [vmem:[#allocation3 + $0x4] sm:$0x3] }
 0xe18   :  { %1569 = vmatpush3.bf16.msra.mxu0 %v1976_v12  ;;  %1492 = vmatprep.mubr.msk.f32.mxu0 %vm1835_vm0, %v1836_v1 }
 0xe19   :  { %1570 = vmatprep.subr.bf16.mxu0 %v1834_v0 }
 0xe1c   :  { %1572 = vmatpush3.bf16.msra.mxu0 %v1979_v14 }
 0xe1d   :  { %1579 = vmatprep.subr.bf16.mxu0 %v1834_v0 }
 0xeea   :  { %v806_v55 = vpop.f32.mrb[6].mxu0 }
 0xeeb   :  { %v810_v56 = vadd.f32 %v806_v55, %v733_v54  ;;  %v1472_v57 = vpop.f32.mrb[7].mxu0  ;;  %v1066_v55 = vld [vmem:[#allocation3 + $0x6] sm:$0x3] }
 0xeec   :  { %v1093_v57 = vrot.slane %v1065_v53, 6 }
 0xeed   :  { %1640 = vtanh.f32 %v810_v56  ;;  %v1332_v59 = vmul.f32 -1.442695, %v810_v56  ;;  %v1090_v56 = vrot.slane %v1064_v51, 7 }
 0xeef   :  { %1642 = vpow2.f32 %v1332_v59 }
 0xef7   :  { %v1641_v58 = vpop.eup %1640 }
 0xef8   :  { %820 = vrot.lane.b32.xlu1 %v1641_v58, %s1837_s24  ;;  %v1184_v58 = vrot.slane %v1063_v52, 1 }
 0xef9   :  { %v1643_v12 = vpop.eup %1642 }
 0xefa   :  { %v814_v60 = vadd.f32 1.0, %v1643_v12  ;;  %v1186_v12 = vrot.slane %v1065_v53, 7 }
 0xefc   :  { %1644 = vrcp.f32 %v814_v60 }
 0xf06   :  { %v1645_v61 = vpop.eup %1644 }
 0xf07   :  { %v818_v14 = vmul.f32 %v1645_v61, %v720_v49 }
 0xf6a   :  { %v821_v62 = vpop.permute.xlu1 %820 }
 0xf6b   :  { %v823_v63 = vmul.f32 %v1645_v61, %v821_v62  ;;  %v1185_v62 = vsel %vm1091_vm3, %v1064_v51, %v1184_v58 }
 0xf6d   :  { %825 = vrot.lane.b32.xlu0 %v823_v63, %s1838_s5  ;;  %v1188_v63 = vrot.slane %v1066_v55, 6 }
 0xfdf   :  { %v826_v2 = vpop.permute.xlu0 %825 }
 0xfe0   :  { %v828_v3 = vadd.f32 %v826_v2, %v818_v14  ;;  %v1092_v14 = vsel %vm1091_vm3, %v1090_v56, %v1063_v52 }
 0xfe2   :  { %1646 = vtanh.f32 %v828_v3 }
 0xfec   :  { %v1647_v4 = vpop.eup %1646 }
 0xfed   :  { %831 = vrot.lane.b32.xlu1 %v1647_v4, %s1837_s24  ;;  %v1095_v4 = vsel %vm1094_vm4, %v1093_v57, %v1092_v14 }
0x105f   :  { %v832_v5 = vpop.permute.xlu1 %831 }
0x1060   :  { %v834_v6 = vmul.f32 %v1645_v61, %v832_v5  ;;  %v1096_v61 = vrot.slane %v1066_v55, 5 }
0x1062   :  { %836 = vrot.lane.b32.xlu0 %v834_v6, %s1838_s5 }
0x10d4   :  { %v837_v7 = vpop.permute.xlu0 %836 }
0x10d5   :  { %840 = vst.msk [vmem:[#allocation3 + $0xa] sm:$0x3] %vm299_vm2, %v837_v7  ;;  %1482 = vmatmul.mubr.msk.f32.vlgmr.msra.gmra.mrb[6].mxu1 %vm102_vm1, %v837_v7 }
0x10d6   :  { %1503 = vmatprep.mubr.msk.f32.mxu1 %vm1835_vm0, %v1836_v1  ;;  %1575 = vmatpush3.bf16.msra.mxu1 %v1574_v45 }
0x10d7   :  { %1576 = vmatprep.subr.bf16.mxu1 %v1834_v0 }
0x10da   :  { %1578 = vmatpush3.bf16.msra.mxu1 %v1577_v47 }
0x10dc   :  { %v1068_v59 = vld [vmem:[#allocation3 + $0xa] sm:$0x3] }
0x10dd   :  { %v1102_v5 = vrot.slane %v1068_v59, 3  ;;  %v1192_v6 = vrot.slane %v1068_v59, 4 }
0x11a8   :  { %v914_v9 = vpop.f32.mrb[6].mxu1 }
0x11a9   :  { %v918_v10 = vadd.f32 %v914_v9, %v841_v8  ;;  %v1483_v11 = vpop.f32.mrb[7].mxu1  ;;  %v1187_v8 = vsel %vm1094_vm4, %v1186_v12, %v1185_v62 }
0x11aa   :  { %v1189_v11 = vsel %vm1097_vm5, %v1188_v63, %v1187_v8 }
0x11ab   :  { %1648 = vtanh.f32 %v918_v10  ;;  %v1334_v15 = vmul.f32 -1.442695, %v918_v10  ;;  %v1098_v10 = vsel %vm1097_vm5, %v1096_v61, %v1095_v4 }
0x11ad   :  { %1650 = vpow2.f32 %v1334_v15 }
0x11b5   :  { %v1649_v13 = vpop.eup %1648 }
0x11b6   :  { %928 = vrot.lane.b32.xlu1 %v1649_v13, %s1837_s24 }
0x11b7   :  { %v1651_v16 = vpop.eup %1650 }
0x11b8   :  { %v922_v17 = vadd.f32 1.0, %v1651_v16 }
0x11ba   :  { %1652 = vrcp.f32 %v922_v17 }
0x11c4   :  { %v1653_v18 = vpop.eup %1652 }
0x11c5   :  { %v926_v21 = vmul.f32 %v1653_v18, %v828_v3 }
0x1228   :  { %v929_v19 = vpop.permute.xlu1 %928 }
0x1229   :  { %v931_v20 = vmul.f32 %v1653_v18, %v929_v19 }
0x122b   :  { %933 = vrot.lane.b32.xlu0 %v931_v20, %s1838_s5 }
0x129d   :  { %v934_v22 = vpop.permute.xlu0 %933 }
0x129e   :  { %v936_v23 = vadd.f32 %v934_v22, %v926_v21 }
0x12a0   :  { %1654 = vtanh.f32 %v936_v23 }
0x12aa   :  { %v1655_v24 = vpop.eup %1654 }
0x12ab   :  { %939 = vrot.lane.b32.xlu1 %v1655_v24, %s1837_s24 }
0x131d   :  { %v940_v25 = vpop.permute.xlu1 %939 }
0x131e   :  { %v942_v26 = vmul.f32 %v1653_v18, %v940_v25 }
0x1320   :  { %944 = vrot.lane.b32.xlu0 %v942_v26, %s1838_s5 }
0x1392   :  { %v945_v27 = vpop.permute.xlu0 %944 }
0x1393   :  { %948 = vst.msk [vmem:[#allocation3 + $0xc] sm:$0x3] %vm299_vm2, %v945_v27  ;;  %1493 = vmatmul.mubr.msk.f32.vlgmr.msra.gmra.mrb[8].mxu0 %vm102_vm1, %v945_v27 }
0x1394   :  { %1514 = vmatprep.mubr.msk.f32.mxu0 %vm1835_vm0, %v1836_v1  ;;  %1581 = vmatpush3.bf16.msra.mxu0 %v1574_v45 }
0x1395   :  { %1582 = vmatprep.subr.bf16.mxu0 %v1834_v0  ;;  %v1067_v0 = vld [vmem:[#allocation3 + $0x8] sm:$0x3] }
0x1396   :  { %v1099_v2 = vrot.slane %v1067_v0, 4  ;;  %v1190_v3 = vrot.slane %v1067_v0, 5 }
0x1398   :  { %1584 = vmatpush3.bf16.msra.mxu0 %v1577_v47  ;;  %v1101_v15 = vsel %vm1100_vm6, %v1099_v2, %v1098_v10  ;;  %v1191_v16 = vsel %vm1100_vm6, %v1190_v3, %v1189_v11 }
0x1399   :  { %v1104_v17 = vsel %vm1103_vm7, %v1102_v5, %v1101_v15  ;;  %v1193_v19 = vsel %vm1103_vm7, %v1192_v6, %v1191_v16 }
0x139a   :  { %v1069_v60 = vld [vmem:[#allocation3 + $0xc] sm:$0x3] }
0x139b   :  { %v1105_v7 = vrot.slane %v1069_v60, 2  ;;  %v1194_v9 = vrot.slane %v1069_v60, 3 }
0x139d   :  { %v1107_v21 = vsel %vm1106_vm8, %v1105_v7, %v1104_v17  ;;  %v1195_v22 = vsel %vm1106_vm8, %v1194_v9, %v1193_v19 }
0x1466   :  { %v1022_v29 = vpop.f32.mrb[8].mxu0 }
0x1467   :  { %v1026_v30 = vadd.f32 %v1022_v29, %v949_v28  ;;  %v1494_v31 = vpop.f32.mrb[9].mxu0 }
0x1469   :  { %1656 = vtanh.f32 %v1026_v30  ;;  %v1336_v33 = vmul.f32 -1.442695, %v1026_v30 }
0x146b   :  { %1658 = vpow2.f32 %v1336_v33 }
0x1473   :  { %v1657_v32 = vpop.eup %1656 }
0x1474   :  { %1036 = vrot.lane.b32.xlu1 %v1657_v32, %s1837_s24 }
0x1475   :  { %v1659_v34 = vpop.eup %1658 }
0x1476   :  { %v1030_v35 = vadd.f32 1.0, %v1659_v34 }
0x1478   :  { %1660 = vrcp.f32 %v1030_v35 }
0x1482   :  { %v1661_v36 = vpop.eup %1660 }
0x1483   :  { %v1034_v39 = vmul.f32 %v1661_v36, %v936_v23 }
0x14e6   :  { %v1037_v37 = vpop.permute.xlu1 %1036 }
0x14e7   :  { %v1039_v38 = vmul.f32 %v1661_v36, %v1037_v37 }
0x14e9   :  { %1041 = vrot.lane.b32.xlu0 %v1039_v38, %s1838_s5 }
0x155b   :  { %v1042_v1 = vpop.permute.xlu0 %1041 }
0x155c   :  { %v1044_v40 = vadd.f32 %v1042_v1, %v1034_v39 }
0x155e   :  { %1662 = vtanh.f32 %v1044_v40 }
0x1568   :  { %v1663_v41 = vpop.eup %1662 }
0x1569   :  { %1047 = vrot.lane.b32.xlu1 %v1663_v41, %s1837_s24 }
0x156d   :  { %1059 = vrot.lane.b32.xlu1 %v1044_v40, %s1839_s2 }
0x15db   :  { %v1048_v48 = vpop.permute.xlu1 %1047 }
0x15dc   :  { %v1050_v49 = vmul.f32 %v1661_v36, %v1048_v48 }
0x15de   :  { %1052 = vrot.lane.b32.xlu0 %v1050_v49, %s1838_s5 }
0x15df   :  { %v1060_v50 = vpop.permute.xlu1 %1059 }
0x15e0   :  { %1062 = vst.msk [vmem:[#allocation15] sm:$0x3] %vm299_vm2, %v1060_v50 }
0x1650   :  { %v1053_v54 = vpop.permute.xlu0 %1052 }
0x1651   :  { %1056 = vst.msk [vmem:[#allocation3 + $0xe] sm:$0x3] %vm299_vm2, %v1053_v54  ;;  %1057 = vst.msk [vmem:[#allocation13] sm:$0x3] %vm299_vm2, %v1053_v54 }
0x1658   :  { %v1070_v13 = vld [vmem:[#allocation3 + $0xe] sm:$0x3] }
0x1659   :  { %v1108_v18 = vrot.slane %v1070_v13, 1  ;;  %v1196_v20 = vrot.slane %v1070_v13, 2 }
0x165b   :  { %v1110_v23 = vsel %vm1109_vm9, %v1108_v18, %v1107_v21  ;;  %v1197_v24 = vsel %vm1109_vm9, %v1196_v20, %v1195_v22 }
0x165c   :  { %1504 = vmatmul.mubr.msk.f32.vlgmr.msra.gmra.mrb[8].mxu1 %vm102_vm1, %v1110_v23  ;;  %1515 = vmatmul.mubr.msk.f32.vlgmr.msra.gmra.mrb[10].mxu0 %vm102_vm1, %v1197_v24 }
0x165d   :  { %1763 = shalt.err (!%p1760_p8)
}
0x165e   :  { %s1764_s12 = scalar_lea.hbm %s2149_s9, 32 }
0x165f   :  { %p1765_p9 = scmp.ne.s32.totalorder %s2149_s9, %s1764_s12  ;;  %p1768_p10 = scmp.lt.u32.totalorder %s1764_s12, %s2149_s9 }
0x1661   :  { %p1770_p11 = pnand %p1768_p10, %p1765_p9 }
0x1663   :  { %1773 = shalt.err (!%p1770_p11)
}
0x1664   :  { %1293 = dma.vmem_to_hbm [thread:$0]  %s1291_s30, 32, %s2149_s9, [#allocation14]  }
0x1665   :  { %s1841_s19 = smov [#allocation15]  }
0x1666   :  { %s1300_s21 = sshll.u32 %s1841_s19, 4  ;;  %s1301_s21 = int_to_ptr.vmem [resolvable:$true] %s1300_s21 }
0x1667   :  { %s1774_s4 = scalar_lea.vmem %s1301_s21, 32  ;;  %p1779_p13 = scmp.lt.s32.totalorder %s1301_s21, %s1301_s21 }
0x1668   :  { %p1775_p12 = scmp.ne.s32.totalorder %s1301_s21, %s1774_s4  ;;  %p1780_p0 = scmp.lt.s32.totalorder %s1774_s4, %s1774_s4 }
0x166a   :  { %p1781_p1 = por %p1780_p0, %p1779_p13 }
0x166c   :  { %p1782_p2 = pnand %p1781_p1, %p1775_p12 }
0x166e   :  { %1785 = shalt.err (!%p1782_p2)
}
0x166f   :  { %s1786_s22 = scalar_lea.hbm %s2150_s10, 32 }
0x1670   :  { %p1787_p3 = scmp.ne.s32.totalorder %s2150_s10, %s1786_s22  ;;  %p1790_p4 = scmp.lt.u32.totalorder %s1786_s22, %s2150_s10 }
0x1672   :  { %p1792_p5 = pnand %p1790_p4, %p1787_p3 }
0x1674   :  { %1795 = shalt.err (!%p1792_p5)
}
0x1675   :  { %1303 = dma.vmem_to_hbm [thread:$0]  %s1301_s21, 32, %s2150_s10, [#allocation14]   ;;  %v1337_v25 = vld [vmem:[%s2147_s7] ss:$0 sm:$0xff] }
0x1676   :  { %s1842_s29 = smov [#allocation12]  }
0x1677   :  { %s1277_s30 = sshll.u32 %s1842_s29, 4  ;;  %s1278_s30 = int_to_ptr.vmem [resolvable:$true] %s1277_s30 }
0x1678   :  { %s1796_s11 = scalar_lea.vmem %s1278_s30, 256  ;;  %p1801_p7 = scmp.lt.s32.totalorder %s1278_s30, %s1278_s30 }
0x1679   :  { %p1797_p6 = scmp.ne.s32.totalorder %s1278_s30, %s1796_s11  ;;  %p1802_p8 = scmp.lt.s32.totalorder %s1796_s11, %s1796_s11 }
0x167b   :  { %p1803_p9 = por %p1802_p8, %p1801_p7 }
0x167d   :  { %p1804_p10 = pnand %p1803_p9, %p1797_p6 }
0x172f   :  { %v1179_v26 = vpop.f32.mrb[8].mxu1  ;;  %v1266_v27 = vpop.f32.mrb[10].mxu0 }
0x1730   :  { %v1180_v28 = vadd.f32 %v1337_v25, %v1179_v26  ;;  %v1267_v29 = vadd.f32 %v1337_v25, %v1266_v27  ;;  %v1505_v30 = vpop.f32.mrb[9].mxu1  ;;  %v1516_v31 = vpop.f32.mrb[11].mxu0 }
0x1732   :  { %1183 = vst [vmem:[#allocation12] sm:$0xff] %v1180_v28  ;;  %1271 = vst [vmem:[#allocation12 + $0x8] sm:$0xff] %v1267_v29 }
0x1733   :  { %1807 = shalt.err (!%p1804_p10)
}
0x1734   :  { %s1808_s0 = scalar_lea.hbm %s2148_s8, 256 }
0x1735   :  { %p1809_p11 = scmp.ne.s32.totalorder %s2148_s8, %s1808_s0  ;;  %p1812_p12 = scmp.lt.u32.totalorder %s1808_s0, %s2148_s8 }
0x1737   :  { %p1814_p13 = pnand %p1812_p12, %p1809_p11 }
0x1739   :  { %1817 = shalt.err (!%p1814_p13)
}
0x173a   :  { %1283 = dma.vmem_to_hbm [thread:$0]  %s1278_s30, 256, %s2148_s8, [#allocation6], %s1830_s25, %s1830_s25, %s1831_s26  }
0x173b   :  { %1824 = dma.done.wait [#allocation6], 256  }
0x173c   :  { %1825 = vsyncadd [#allocation6], 4294967040 }
0x173d   :  { %1826 = dma.done.wait [#allocation14], 64  }
0x173e   :  { %1827 = vsyncadd [#allocation14], 4294967232 }
0x173f   :  { %1313 = vsyncpa [#allocation5], 1 }
0x1740   :  { %1314 = vsyncpa [#allocation8], 1 }
0x1741   :  { %1315 = vsyncpa [#allocation11], 1 }
0x1742   :  { %1316 = vsyncpa [#allocation6], 1 }
0x1743   :  { %1317 = vsyncpa [#allocation14], 1 }

</bundles_post_ra>
